<compile_context>
chip_gen: v5e
topology: v5e:2x2
jax: 0.10.0
libtpu: 0.0.40
codegen_flags: <defaults>
</compile_context>

<pallas_src>
import functools

import jax
import jax.numpy as jnp
from jax.experimental import pallas as pl
from jax.experimental.pallas import tpu as pltpu


def _weighted_mse_kernel(pred_ref, tgt_ref, w_ref, out_ref, *,
                         d_total, block_d, num_d_blocks):
    # pred_ref / tgt_ref : (BN, TD) tile of the flattened inputs (native dtype)
    # w_ref              : (BN, 1)  per-row weights, pre-scaled by 1/(D*N), f32
    # out_ref            : (BN, 128) lane-dense accumulator, resident across
    #                      the D ("arbitrary", last) grid axis.
    k = pl.program_id(1)

    @pl.when(k == 0)
    def _():
        out_ref[...] = jnp.zeros_like(out_ref)

    def load_err():
        return pred_ref[...].astype(jnp.float32) - tgt_ref[...].astype(jnp.float32)

    def accumulate(err):
        # Per-row sum of squared error for this D tile (XLU cross-lane reduce,
        # hidden under the DMA stream). Weight already carries 1/(D*N);
        # broadcast across the 128 output lanes -> unmasked lane-dense stores.
        row_sse = jnp.sum(err * err, axis=-1, keepdims=True)   # (BN, 1)
        out_ref[...] += row_sse * w_ref[...]                    # (BN, 128)

    def masked_tile():
        err = load_err()
        col = k * block_d + jax.lax.broadcasted_iota(jnp.int32, err.shape, 1)
        accumulate(jnp.where(col < d_total, err, 0.0))

    if d_total % block_d == 0:
        # No D padding anywhere: single unmasked path.
        accumulate(load_err())
    elif num_d_blocks == 1:
        # Only one D tile and it is padded: masked path only.
        masked_tile()
    else:
        # Mask only the last D tile; interior tiles take the fast path.
        last = pl.num_programs(1) - 1

        @pl.when(k != last)
        def _():
            accumulate(load_err())

        @pl.when(k == last)
        def _():
            masked_tile()


def _round_up(x, m):
    return ((x + m - 1) // m) * m


def _vmem_budgets():
    """Generation-aware (in-flight input budget, vmem_limit_bytes)."""
    mib = 1024 * 1024
    try:
        cap = int(pltpu.get_tpu_info().vmem_capacity_bytes)
    except Exception:
        cap = 64 * mib                      # conservative: v7x-sized fallback
    if cap >= 96 * mib:                     # v5e / v6e: 128 MiB physical VMEM
        return 56 * mib, 96 * mib
    return 36 * mib, 48 * mib               # v7x: 64 MiB physical VMEM per TC


def _choose_tiles(n, d, itemsize, budget):
    """Pick (BN, TD) tiles aligned to the dtype's native (sublane, 128) pack,
    keeping the double-buffered in-flight input set (2 inputs x 2 buffers)
    within `budget` bytes."""
    sub = {1: 32, 2: 16}.get(itemsize, 8)   # native sublane pack per dtype
    d_full = _round_up(d, 128)

    # Lane tile: full row (kb=1 -> one contiguous HBM run per sample, no tail
    # mask) whenever it fits at the minimal sublane count; else a wide tile up
    # to 8192 lanes.
    if 4 * sub * d_full * itemsize <= budget:
        td = d_full
    else:
        td = min(d_full, 8192)
        while td > 128 and 4 * sub * td * itemsize > budget:
            td //= 2
        td = max(128, _round_up(td, 128))

    # Batch tile: grow by bytes (constant DMA step size across dtypes). Cap at
    # n_pad//2 so the "parallel" batch axis has >= 2 blocks and both v7x
    # TensorCores stream (harmless on single-TC v5e/v6e).
    n_pad = _round_up(n, sub)
    bn_cap = n_pad
    if n_pad >= 2 * sub:
        bn_cap = (n_pad // 2 // sub) * sub
    bn = sub
    while bn * 2 <= bn_cap and 4 * (bn * 2) * td * itemsize <= budget:
        bn *= 2
    return bn, td


def weighted_mse_loss(prediction, target, weights):
    """prediction/target: (N, C, H, W); weights: (N,). Returns scalar f32."""
    n, c, h, w = prediction.shape
    d = c * h * w

    # Flatten each sample to a lane-dense row. No dtype cast: stream native
    # dtype (e.g. bf16) through HBM and upcast in-kernel.
    pred2 = prediction.reshape(n, d)
    tgt2 = target.reshape(n, d)

    itemsize = jnp.dtype(prediction.dtype).itemsize
    budget, vmem_limit = _vmem_budgets()
    bn, td = _choose_tiles(n, d, itemsize, budget)

    nb = pl.cdiv(n, bn)          # batch blocks ("parallel")
    kb = pl.cdiv(d, td)          # D tiles     ("arbitrary", reduction)
    n_pad = nb * bn

    # Fold both means into the weights: 1/(D*N). Tiny (N,1) array; pad the
    # batch tail with zeros (padded rows contribute nothing... see NOTE below).
    w_scaled = (weights.astype(jnp.float32) / jnp.float32(d * n)).reshape(n, 1)
    if n_pad != n:
        w_scaled = jnp.pad(w_scaled, ((0, n_pad - n), (0, 0)))

    kernel = functools.partial(_weighted_mse_kernel,
                               d_total=d, block_d=td, num_d_blocks=kb)

    out = pl.pallas_call(
        kernel,
        out_shape=jax.ShapeDtypeStruct((n_pad, 128), jnp.float32),
        grid_spec=pltpu.PrefetchScalarGridSpec(
            num_scalar_prefetch=0,
            grid=(nb, kb),
            in_specs=[
                pl.BlockSpec((bn, td), lambda b, k: (b, k)),
                pl.BlockSpec((bn, td), lambda b, k: (b, k)),
                pl.BlockSpec((bn, 1), lambda b, k: (b, 0)),
            ],
            out_specs=pl.BlockSpec((bn, 128), lambda b, k: (b, 0)),
        ),
        compiler_params=pltpu.CompilerParams(
            dimension_semantics=("parallel", "arbitrary"),
            vmem_limit_bytes=vmem_limit,
        ),
    )(pred2, tgt2, w_scaled)

    # NOTE: batch-tail rows [n, n_pad) read Pallas boundary padding of pred/tgt
    # (possibly NaN/Inf); 0-weight * Inf = NaN, so those rows MUST be dropped
    # here. Do NOT refactor to sum all output rows inside the kernel.
    return jnp.sum(out[:n, 0])


if __name__ == "__main__":
    key = jax.random.PRNGKey(0)
    k1, k2, k3 = jax.random.split(key, 3)

    N, C, H, W = 2, 4, 16, 16
    prediction = jax.random.normal(k1, (N, C, H, W), dtype=jnp.float32)
    target = jax.random.normal(k2, (N, C, H, W), dtype=jnp.float32)
    weights = jax.random.uniform(k3, (N,), dtype=jnp.float32)

    loss = weighted_mse_loss(prediction, target, weights)
    loss = jax.block_until_ready(loss)

    # Reference check (plain JAX, mirrors the PyTorch module).
    err = prediction - target
    per_sample = jnp.mean(err * err, axis=(1, 2, 3))
    ref = jnp.mean(per_sample * weights)
    assert jnp.allclose(loss, ref, rtol=1e-5, atol=1e-6), (loss, ref)

    print("KERNEL_OK")
</pallas_src>

<mosaic_0001>
module attributes {stable_mosaic.version = 11 : i64} {
  func.func @_weighted_mse_kernel(%arg0: i32, %arg1: i32, %arg2: memref<8x1024xf32, #tpu.memory_space<vmem>>, %arg3: memref<8x1024xf32, #tpu.memory_space<vmem>>, %arg4: memref<8x1xf32, #tpu.memory_space<vmem>>, %arg5: memref<8x128xf32, #tpu.memory_space<vmem>>) attributes {dimension_semantics = [#tpu.dimension_semantics<parallel>, #tpu.dimension_semantics<arbitrary>], iteration_bounds = array<i64: 1, 1>, scalar_prefetch = 0 : i64, scratch_operands = 0 : i64, tpu.core_type = #tpu.core_type<tc>, window_params = [{transform_indices = @transform_0, window_bounds = array<i64: 8, 1024>}, {transform_indices = @transform_1, window_bounds = array<i64: 8, 1024>}, {transform_indices = @transform_2, window_bounds = array<i64: 8, 1>}, {transform_indices = @transform_3, window_bounds = array<i64: 8, 128>}]} {
    %c0_i32 = arith.constant 0 : i32
    %0 = arith.cmpi eq, %arg1, %c0_i32 : i32
    %1 = arith.extui %0 : i1 to i32
    %c0_i32_0 = arith.constant 0 : i32
    %2 = arith.cmpi ne, %1, %c0_i32_0 : i32
    scf.if %2 {
      %cst_10 = arith.constant 0.000000e+00 : f32
      %15 = vector.broadcast %cst_10 : f32 to vector<8x128xf32>
      %c0_11 = arith.constant 0 : index
      %c0_12 = arith.constant 0 : index
      %16 = vector.load %arg5[%c0_11, %c0_12] : memref<8x128xf32, #tpu.memory_space<vmem>>, vector<8x128xf32>
      tpu.vector_store %arg5[%c0_11, %c0_12], %15 {strides = array<i32>} : memref<8x128xf32, #tpu.memory_space<vmem>>, vector<8x128xf32>,
    } else {
    }
    %c0 = arith.constant 0 : index
    %c0_1 = arith.constant 0 : index
    %3 = vector.load %arg2[%c0, %c0_1] : memref<8x1024xf32, #tpu.memory_space<vmem>>, vector<8x1024xf32>
    %c0_2 = arith.constant 0 : index
    %c0_3 = arith.constant 0 : index
    %4 = vector.load %arg3[%c0_2, %c0_3] : memref<8x1024xf32, #tpu.memory_space<vmem>>, vector<8x1024xf32>
    %5 = arith.subf %3, %4 : vector<8x1024xf32>
    %6 = arith.mulf %5, %5 : vector<8x1024xf32>
    %cst = arith.constant dense<0.000000e+00> : vector<8xf32>
    %7 = vector.multi_reduction <add>, %6, %cst [1] : vector<8x1024xf32> to vector<8xf32>
    %8 = vector.shape_cast %7 : vector<8xf32> to vector<8x1xf32>
    %c0_4 = arith.constant 0 : index
    %c0_5 = arith.constant 0 : index
    %9 = vector.load %arg5[%c0_4, %c0_5] : memref<8x128xf32, #tpu.memory_space<vmem>>, vector<8x128xf32>
    %c0_6 = arith.constant 0 : index
    %c0_7 = arith.constant 0 : index
    %10 = vector.load %arg4[%c0_6, %c0_7] : memref<8x1xf32, #tpu.memory_space<vmem>>, vector<8x1xf32>
    %11 = arith.mulf %8, %10 : vector<8x1xf32>
    %12 = vector.broadcast %11 : vector<8x1xf32> to vector<8x128xf32>
    %13 = arith.addf %9, %12 : vector<8x128xf32>
    %c0_8 = arith.constant 0 : index
    %c0_9 = arith.constant 0 : index
    %14 = vector.load %arg5[%c0_8, %c0_9] : memref<8x128xf32, #tpu.memory_space<vmem>>, vector<8x128xf32>
    tpu.vector_store %arg5[%c0_8, %c0_9], %13 {strides = array<i32>} : memref<8x128xf32, #tpu.memory_space<vmem>>, vector<8x128xf32>,
    return
  }
  func.func @transform_0(%arg0: i32, %arg1: i32) -> (i32, i32) {
    %c0_i32 = arith.constant 0 : i32
    return %arg0, %arg1 : i32, i32
  }
  func.func @transform_1(%arg0: i32, %arg1: i32) -> (i32, i32) {
    %c0_i32 = arith.constant 0 : i32
    return %arg0, %arg1 : i32, i32
  }
  func.func @transform_2(%arg0: i32, %arg1: i32) -> (i32, i32) {
    %c0_i32 = arith.constant 0 : i32
    %c0_i32_0 = arith.constant 0 : i32
    return %arg0, %c0_i32 : i32, i32
  }
  func.func @transform_3(%arg0: i32, %arg1: i32) -> (i32, i32) {
    %c0_i32 = arith.constant 0 : i32
    %c0_i32_0 = arith.constant 0 : i32
    return %arg0, %c0_i32 : i32, i32
  }
}

</mosaic_0001>

<bundles_post_ra>
// kernel: tpu_custom_call.1
= control target key start
LH: loop header
LB: loop body
LE: loop exit
PB: predicated region body
PF: predicated region fallthrough
CT: control target
= control target key end

     0   :  { %8 = vsyncpa [#allocation3], 0  ;;  %s284_s0 = inlined_call_operand.hbm [shape: f32[2,1024], index: 0, kind: input, shape index: {}]   ;;  %s285_s1 = inlined_call_operand.hbm [shape: f32[2,1024], index: 1, kind: input, shape index: {}]   ;;  %s286_s2 = inlined_call_operand.vmem [shape: f32[8,1], index: 2, kind: input, shape index: {}]   ;;  %s287_s3 = inlined_call_operand.hbm [shape: f32[8,128], index: 3, kind: output, shape index: {}]  }
   0x1   :  { %9 = vsyncpa [#allocation6], 0 }
   0x2   :  { %10 = vsyncpa [#allocation4], 0 }
   0x3   :  { %14 = vsyncadd [#allocation3], 768  ;;  %s15_s14 = sshll.u32 %s284_s0, 4  ;;  %s246_s15 = smov [#allocation2]   ;;  %s16_s14 = int_to_ptr.hbm [resolvable:$true] %s15_s14 }
   0x4   :  { %s17_s16 = sshll.u32 %s246_s15, 4  ;;  %s247_s17 = smov 256   ;;  %s18_s16 = int_to_ptr.vmem [resolvable:$true] %s17_s16 }
   0x5   :  { %s248_s18 = smov 16  }
   0x6   :  { %23 = dma.hbm_to_vmem [thread:$0]  %s16_s14, 256, %s18_s16, [#allocation3], %s247_s17, %s247_s17, %s248_s18  }
   0x7   :  { %27 = vsyncadd [#allocation6], 768  ;;  %s28_s21 = sshll.u32 %s285_s1, 4  ;;  %s249_s22 = smov [#allocation5]   ;;  %s29_s21 = int_to_ptr.hbm [resolvable:$true] %s28_s21 }
   0x8   :  { %s30_s23 = sshll.u32 %s249_s22, 4  ;;  %s31_s23 = int_to_ptr.vmem [resolvable:$true] %s30_s23 }
   0x9   :  { %36 = dma.hbm_to_vmem [thread:$0]  %s29_s21, 256, %s31_s23, [#allocation6], %s247_s17, %s247_s17, %s248_s18  }
   0xa   :  { %240 = dma.done.wait [#allocation3], 1024  }
   0xb   :  { %241 = vsyncadd [#allocation3], 4294966272 }
   0xc   :  { %242 = dma.done.wait [#allocation6], 1024  }
   0xd   :  { %243 = vsyncadd [#allocation6], 4294966272  ;;  %v52_v0 = vld [vmem:[#allocation2] sm:$0xff]  ;;  %v53_v1 = vld [vmem:[#allocation2 + $0x8] sm:$0xff]  ;;  %v250_v47 = vmov 0   ;;  %s251_s24 = smov [#allocation7]  }
   0xe   :  { %v54_v2 = vld [vmem:[#allocation2 + $0x10] sm:$0xff]  ;;  %v55_v3 = vld [vmem:[#allocation2 + $0x18] sm:$0xff]  ;;  %v56_v4 = vld [vmem:[#allocation2 + $0x20] sm:$0xff]  ;;  %167 = vset.pattern.permute.xlu0 %v250_v47  ;;  %s147_s25 = sshll.u32 %s251_s24, 4  ;;  %s149_s28 = sshll.u32 %s287_s3, 4  ;;  %s148_s25 = int_to_ptr.vmem [resolvable:$true] %s147_s25  ;;  %s150_s28 = int_to_ptr.hbm [resolvable:$true] %s149_s28 }
   0xf   :  { %v57_v5 = vld [vmem:[#allocation2 + $0x28] sm:$0xff]  ;;  %v58_v6 = vld [vmem:[#allocation2 + $0x30] sm:$0xff]  ;;  %v59_v7 = vld [vmem:[#allocation2 + $0x38] sm:$0xff] }
  0x10   :  { %v60_v8 = vld [vmem:[#allocation5] sm:$0xff]  ;;  %v61_v9 = vld [vmem:[#allocation5 + $0x8] sm:$0xff]  ;;  %v62_v10 = vld [vmem:[#allocation5 + $0x10] sm:$0xff] }
  0x11   :  { %v63_v11 = vld [vmem:[#allocation5 + $0x18] sm:$0xff]  ;;  %v68_v12 = vsub.f32 %v52_v0, %v60_v8  ;;  %v64_v13 = vld [vmem:[#allocation5 + $0x20] sm:$0xff]  ;;  %v65_v14 = vld [vmem:[#allocation5 + $0x28] sm:$0xff]  ;;  %v69_v16 = vsub.f32 %v53_v1, %v61_v9  ;;  %v70_v17 = vsub.f32 %v54_v2, %v62_v10 }
  0x12   :  { %v66_v15 = vld [vmem:[#allocation5 + $0x30] sm:$0xff]  ;;  %v71_v18 = vsub.f32 %v55_v3, %v63_v11  ;;  %v67_v19 = vld [vmem:[#allocation5 + $0x38] sm:$0xff]  ;;  %v72_v20 = vsub.f32 %v56_v4, %v64_v13  ;;  %v73_v21 = vsub.f32 %v57_v5, %v65_v14 }
  0x13   :  { %v74_v22 = vsub.f32 %v58_v6, %v66_v15  ;;  %v76_v23 = vmul.f32 %v68_v12, %v68_v12  ;;  %v75_v24 = vsub.f32 %v59_v7, %v67_v19  ;;  %v78_v25 = vmul.f32 %v70_v17, %v70_v17  ;;  %v133_v48 = vld [vmem:[%s286_s2] sm:$0xff] }
  0x14   :  { %v77_v26 = vmul.f32 %v69_v16, %v69_v16  ;;  %v80_v27 = vmul.f32 %v72_v20, %v72_v20  ;;  %v79_v29 = vmul.f32 %v71_v18, %v71_v18  ;;  %v81_v30 = vmul.f32 %v73_v21, %v73_v21 }
  0x15   :  { %v82_v28 = vmul.f32 %v74_v22, %v74_v22  ;;  %92 = vst [vmem:[#allocation1] ss:$4 sm:$0xff] %v76_v23  ;;  %v83_v31 = vmul.f32 %v75_v24, %v75_v24 }
  0x16   :  { %94 = vst [vmem:[#allocation1 + $0x1] ss:$4 sm:$0xff] %v78_v25 }
  0x17   :  { %96 = vst [vmem:[#allocation1 + $0x2] ss:$4 sm:$0xff] %v80_v27 }
  0x18   :  { %98 = vst [vmem:[#allocation1 + $0x3] ss:$4 sm:$0xff] %v82_v28 }
  0x19   :  { %100 = vst [vmem:[#allocation1 + $0x20] ss:$4 sm:$0xff] %v77_v26 }
  0x1a   :  { %102 = vst [vmem:[#allocation1 + $0x21] ss:$4 sm:$0xff] %v79_v29 }
  0x1b   :  { %104 = vst [vmem:[#allocation1 + $0x22] ss:$4 sm:$0xff] %v81_v30 }
  0x1c   :  { %106 = vst [vmem:[#allocation1 + $0x23] ss:$4 sm:$0xff] %v83_v31 }
  0x1f   :  { %v107_v32 = vld.sshfl [vmem:[#allocation1] sm:$0xff pattern:$0x73625140]  ;;  %v108_v33 = vld.sshfl [vmem:[#allocation1 + $0x8] sm:$0xff pattern:$0x73625140] }
  0x20   :  { %v109_v34 = vld.sshfl [vmem:[#allocation1 + $0x10] sm:$0xff pattern:$0x73625140]  ;;  %v123_v35 = vadd.f32 %v108_v33, %v107_v32  ;;  %v110_v36 = vld.sshfl [vmem:[#allocation1 + $0x18] sm:$0xff pattern:$0x73625140] }
  0x22   :  { %v124_v37 = vadd.f32 %v123_v35, %v109_v34 }
  0x23   :  { %v111_v38 = vld.sshfl [vmem:[#allocation1 + $0x20] sm:$0xff pattern:$0x73625140]  ;;  %v112_v40 = vld.sshfl [vmem:[#allocation1 + $0x28] sm:$0xff pattern:$0x73625140] }
  0x24   :  { %v125_v39 = vadd.f32 %v124_v37, %v110_v36  ;;  %v113_v42 = vld.sshfl [vmem:[#allocation1 + $0x30] sm:$0xff pattern:$0x73625140]  ;;  %v114_v44 = vld.sshfl [vmem:[#allocation1 + $0x38] sm:$0xff pattern:$0x73625140] }
  0x26   :  { %v126_v41 = vadd.f32 %v125_v39, %v111_v38 }
  0x28   :  { %v127_v43 = vadd.f32 %v126_v41, %v112_v40 }
  0x2a   :  { %v128_v45 = vadd.f32 %v127_v43, %v113_v42 }
  0x2c   :  { %v129_v46 = vadd.f32 %v128_v45, %v114_v44 }
  0x2e   :  { %130 = vadd.xlane.f32.xlu0 %v129_v46 }
  0xa1   :  { %v131_v49 = vpop.xlane.xlu0 %130 }
  0xa2   :  { %v134_v50 = vmul.f32 %v133_v48, %v131_v49 }
  0xa4   :  { %137 = vperm.xlu0 %167, %v134_v50  }
 0x116   :  { %v138_v51 = vpop.permute.xlu0 %137 }
 0x117   :  { %141 = vst [vmem:[#allocation7] sm:$0xff] %v138_v51 }
 0x118   :  { %152 = dma.vmem_to_hbm [thread:$0]  %s148_s25, 128, %s150_s28, [#allocation4]  }
 0x119   :  { %244 = dma.done.wait [#allocation4], 128  }
 0x11a   :  { %245 = vsyncadd [#allocation4], 4294967168 }
 0x11b   :  { %157 = vsyncpa [#allocation3], 1 }
 0x11c   :  { %158 = vsyncpa [#allocation6], 1 }
 0x11d   :  { %159 = vsyncpa [#allocation4], 1 }

</bundles_post_ra>
